<compile_context>
chip_gen: v5e
topology: v5e:2x2
jax: 0.10.0
libtpu: 0.0.40
codegen_flags: <defaults>
</compile_context>

<pallas_src>
import jax
import jax.numpy as jnp
from jax.experimental import pallas as pl
from jax.experimental.pallas import tpu as pltpu


def _wlp_kernel(wn_ref, x_ref, o_ref, acc_ref):
    # wn_ref : SMEM (L,) float32    -- pre-normalized layer weights (scalar prefetch)
    # x_ref  : VMEM (TR, LW)        -- one layer's tile (layer dim squeezed)
    # o_ref  : VMEM (TR, LW)        -- pooled output tile (resident across the L axis)
    # acc_ref: VMEM (TR, LW) f32    -- running weighted sum
    l = pl.program_id(1)
    w_l = wn_ref[l]
    contrib = w_l * x_ref[...].astype(jnp.float32)

    @pl.when(l == 0)
    def _():
        acc_ref[...] = contrib

    @pl.when(l > 0)
    def _():
        acc_ref[...] += contrib

    @pl.when(l == pl.num_programs(1) - 1)
    def _():
        o_ref[...] = acc_ref[...].astype(o_ref.dtype)


def weighted_layer_pooling(hidden_states, layer_weights, layer_start=1):
    """hidden_states: (L_total, B, S, H) stacked layers; layer_weights: (L_total - layer_start,)."""
    L_total, B, S, H = hidden_states.shape
    L = L_total - layer_start
    assert L >= 1
    assert layer_weights.shape == (L,)
    dtype = hidden_states.dtype
    itemsize = jnp.dtype(dtype).itemsize

    # Pre-normalize weights: (w*x).sum(0)/w.sum() == ((w/w.sum())*x).sum(0).
    wn = (layer_weights.astype(jnp.float32) / jnp.sum(layer_weights).astype(jnp.float32))

    # ---- Lane-dense 2-D view of each layer: (rows, LW), LW a multiple of 128 if possible.
    total = B * S * H
    LW = None
    for cand in (1024, 512, 256, 128):
        if total % cand == 0:
            LW = cand
            break
    if LW is None:
        # Fall back: keep H as the (full-extent) last axis; legal, just not lane-dense.
        LW = H
    rows = total // LW
    x = hidden_states.reshape(L_total, rows, LW)  # contiguous reshape: no HBM copy

    # ---- Row tile: ~1M elements (~4 MiB f32) per block, sublane-aligned or full-extent.
    target_elems = 1 << 20
    TR = max(1, min(rows, target_elems // max(LW, 1)))
    if TR >= 8:
        TR = (TR // 8) * 8
    num_row_tiles = pl.cdiv(rows, TR)

    grid_spec = pltpu.PrefetchScalarGridSpec(
        num_scalar_prefetch=1,
        grid=(num_row_tiles, L),  # reduction axis (layers) innermost
        in_specs=[
            # Layer offset folded into index_map: only layers [layer_start, L_total) are read.
            pl.BlockSpec((None, TR, LW), lambda r, l, w: (l + layer_start, r, 0)),
        ],
        out_specs=pl.BlockSpec((TR, LW), lambda r, l, w: (r, 0)),
        scratch_shapes=[pltpu.VMEM((TR, LW), jnp.float32)],
    )

    # VMEM budget: double-buffered input + double-buffered output + f32 accumulator + headroom.
    in_block = TR * LW * itemsize
    out_block = TR * LW * itemsize
    acc_block = TR * LW * 4
    vmem_needed = 2 * in_block + 2 * out_block + acc_block + (2 << 20)
    vmem_limit = int(min(max(vmem_needed, 16 * 1024 * 1024), 32 * 1024 * 1024))

    cost = pl.CostEstimate(
        flops=2 * L * total,
        transcendentals=0,
        bytes_accessed=(L + 1) * total * itemsize,
    )

    out2d = pl.pallas_call(
        _wlp_kernel,
        out_shape=jax.ShapeDtypeStruct((rows, LW), dtype),
        grid_spec=grid_spec,
        compiler_params=pltpu.CompilerParams(
            dimension_semantics=("parallel", "arbitrary"),
            vmem_limit_bytes=vmem_limit,
        ),
        cost_estimate=cost,
    )(wn, x)

    return out2d.reshape(B, S, H)


if __name__ == "__main__":
    # Module config (synthetic, deterministic init).
    num_hidden_layers = 4
    layer_start = 1
    L_total = num_hidden_layers + 1  # embeddings layer + hidden layers
    B, S, H = 2, 8, 32

    key = jax.random.PRNGKey(0)
    k_x, k_w = jax.random.split(key)
    # Stacked hidden states, as torch.stack(hidden_states) would produce.
    hidden_states = jax.random.normal(k_x, (L_total, B, S, H), dtype=jnp.float32)
    # Default module init is all-ones weights; perturb deterministically so the
    # weighting is actually exercised.
    n_w = num_hidden_layers + 1 - layer_start
    layer_weights = jnp.ones((n_w,), jnp.float32) + 0.1 * jax.random.normal(
        k_w, (n_w,), jnp.float32
    )

    out = weighted_layer_pooling(hidden_states, layer_weights, layer_start)
    out = jax.block_until_ready(out)

    # Pure-JAX reference (mirrors the PyTorch forward).
    x_ref = hidden_states[layer_start:]
    wf = layer_weights[:, None, None, None]
    ref = (wf * x_ref).sum(axis=0) / layer_weights.sum()

    assert out.shape == (B, S, H)
    assert jnp.allclose(out, ref, atol=1e-5, rtol=1e-5), "mismatch vs reference"
    print("KERNEL_OK")
</pallas_src>

<mosaic_0001>
module attributes {stable_mosaic.version = 11 : i64} {
  func.func @_wlp_kernel(%arg0: i32, %arg1: i32, %arg2: memref<4xf32, #tpu.memory_space<smem>>, %arg3: memref<1x1x512xf32, #tpu.memory_space<vmem>>, %arg4: memref<1x512xf32, #tpu.memory_space<vmem>>, %arg5: memref<1x512xf32, #tpu.memory_space<vmem>>) attributes {dimension_semantics = [#tpu.dimension_semantics<parallel>, #tpu.dimension_semantics<arbitrary>], iteration_bounds = array<i64: 1, 4>, scalar_prefetch = 1 : i64, scratch_operands = 1 : i64, tpu.core_type = #tpu.core_type<tc>, window_params = [{transform_indices = @transform_0, window_bounds = array<i64: 1, 1, 512>}, {transform_indices = @transform_1, window_bounds = array<i64: 1, 512>}]} {
    %0 = arith.index_cast %arg1 : i32 to index
    %1 = memref.load %arg2[%0] : memref<4xf32, #tpu.memory_space<smem>>
    %c0 = arith.constant 0 : index
    %c0_0 = arith.constant 0 : index
    %c0_1 = arith.constant 0 : index
    %2 = vector.load %arg3[%c0, %c0_0, %c0_1] : memref<1x1x512xf32, #tpu.memory_space<vmem>>, vector<1x1x512xf32>
    %3 = vector.shape_cast %2 : vector<1x1x512xf32> to vector<1x512xf32>
    %4 = vector.broadcast %1 : f32 to vector<1x512xf32>
    %5 = arith.mulf %4, %3 : vector<1x512xf32>
    %c0_i32 = arith.constant 0 : i32
    %6 = arith.cmpi eq, %arg1, %c0_i32 : i32
    %7 = arith.extui %6 : i1 to i32
    %c0_i32_2 = arith.constant 0 : i32
    %8 = arith.cmpi ne, %7, %c0_i32_2 : i32
    scf.if %8 {
      %c0_6 = arith.constant 0 : index
      %c0_7 = arith.constant 0 : index
      %15 = vector.load %arg5[%c0_6, %c0_7] : memref<1x512xf32, #tpu.memory_space<vmem>>, vector<1x512xf32>
      tpu.vector_store %arg5[%c0_6, %c0_7], %5 {strides = array<i32>} : memref<1x512xf32, #tpu.memory_space<vmem>>, vector<1x512xf32>,
    } else {
    }
    %c0_i32_3 = arith.constant 0 : i32
    %9 = arith.cmpi sgt, %arg1, %c0_i32_3 : i32
    %10 = arith.extui %9 : i1 to i32
    %c0_i32_4 = arith.constant 0 : i32
    %11 = arith.cmpi ne, %10, %c0_i32_4 : i32
    scf.if %11 {
      %c0_6 = arith.constant 0 : index
      %c0_7 = arith.constant 0 : index
      %15 = vector.load %arg5[%c0_6, %c0_7] : memref<1x512xf32, #tpu.memory_space<vmem>>, vector<1x512xf32>
      %16 = arith.addf %15, %5 : vector<1x512xf32>
      %c0_8 = arith.constant 0 : index
      %c0_9 = arith.constant 0 : index
      %17 = vector.load %arg5[%c0_8, %c0_9] : memref<1x512xf32, #tpu.memory_space<vmem>>, vector<1x512xf32>
      tpu.vector_store %arg5[%c0_8, %c0_9], %16 {strides = array<i32>} : memref<1x512xf32, #tpu.memory_space<vmem>>, vector<1x512xf32>,
    } else {
    }
    %c3_i32 = arith.constant 3 : i32
    %12 = arith.cmpi eq, %arg1, %c3_i32 : i32
    %13 = arith.extui %12 : i1 to i32
    %c0_i32_5 = arith.constant 0 : i32
    %14 = arith.cmpi ne, %13, %c0_i32_5 : i32
    scf.if %14 {
      %c0_6 = arith.constant 0 : index
      %c0_7 = arith.constant 0 : index
      %15 = vector.load %arg5[%c0_6, %c0_7] : memref<1x512xf32, #tpu.memory_space<vmem>>, vector<1x512xf32>
      %c0_8 = arith.constant 0 : index
      %c0_9 = arith.constant 0 : index
      %16 = vector.load %arg4[%c0_8, %c0_9] : memref<1x512xf32, #tpu.memory_space<vmem>>, vector<1x512xf32>
      tpu.vector_store %arg4[%c0_8, %c0_9], %15 {strides = array<i32>} : memref<1x512xf32, #tpu.memory_space<vmem>>, vector<1x512xf32>,
    } else {
    }
    return
  }
  func.func @transform_0(%arg0: i32, %arg1: i32, %arg2: memref<4xf32, #tpu.memory_space<smem>>) -> (i32, i32, i32) {
    %c1_i32 = arith.constant 1 : i32
    %0 = arith.addi %arg1, %c1_i32 : i32
    %c0_i32 = arith.constant 0 : i32
    %c0_i32_0 = arith.constant 0 : i32
    return %0, %arg0, %c0_i32 : i32, i32, i32
  }
  func.func @transform_1(%arg0: i32, %arg1: i32, %arg2: memref<4xf32, #tpu.memory_space<smem>>) -> (i32, i32) {
    %c0_i32 = arith.constant 0 : i32
    %c0_i32_0 = arith.constant 0 : i32
    return %arg0, %c0_i32 : i32, i32
  }
}

</mosaic_0001>

<bundles_post_ra>
// kernel: tpu_custom_call.1
= control target key start
LH: loop header
LB: loop body
LE: loop exit
PB: predicated region body
PF: predicated region fallthrough
CT: control target
= control target key end

     0   :  { %s470_s12 = smov [#allocation4]   ;;  %s583_s0 = inlined_call_operand.hbm [shape: f32[4], index: 0, kind: input, shape index: {}]   ;;  %s584_s1 = inlined_call_operand.hbm [shape: f32[5,1,512], index: 1, kind: input, shape index: {}]   ;;  %s585_s2 = inlined_call_operand.hbm [shape: f32[1,512], index: 2, kind: output, shape index: {}]  }
   0x1   :  { %s8_s11 = sshll.u32 %s583_s0, 4  ;;  %s9_s11 = int_to_ptr.hbm [resolvable:$true] %s8_s11 }
   0x2   :  { %11 = dma.hbm_to_smem %s9_s11, 16, %s470_s12, [#allocation3] }
   0x3   :  { %436 = dma.done.wait [#allocation3], 16 }
   0x4   :  { %437 = vsyncadd [#allocation3], 4294967280 }
   0x5   :  { %14 = sfence }
   0x6   :  { %15 = vsyncpa [#allocation6], 0 }
   0x7   :  { %17 = vsyncpa [#allocation6 + $0x1], 0 }
   0x8   :  { %18 = vsyncpa [#allocation7], 0  ;;  %s490_s13 = smov 0   ;;  %s492_s14 = smov 0  }
   0x9   :  { %s494_s15 = smov 0   ;;  %s496_s16 = smov 0  }
   0xa   :  { %s498_s17 = smov 0   ;;  %s500_s0 = smov 0  }
   0xb LB: > { %s265_s18 = sadd.s32 4294967295, %s468_s0   ;;  %s33_s19 = sadd.s32 1, %s464_s17  ;;  %s468_s0 = sphi %s500_s0, %s24_s0   ;;  %s464_s17 = sphi %s498_s17, %s592_s17   ;;  %s460_s16 = sphi %s496_s16, %s591_s16   ;;  %s456_s15 = sphi %s494_s15, %s590_s15   ;;  %s452_s14 = sphi %s492_s14, %s589_s14   ;;  %s448_s13 = sphi %s490_s13, %s588_s13  }
   0xc   : > { %p34_p0 = scmp.ge.s32.totalorder %s33_s19, 4  ;;  %s47_s20 = sadd.s32 1, %s456_s15 }
   0xd   : > { %p54_p1 = scmp.ne.s32.totalorder %s456_s15, %s452_s14  ;;  %p55_p2 = scmp.eq.s32.totalorder %s468_s0, 0 }
   0xe   : > { %s524_s21 = scalar_select %p34_p0, 0, %s33_s19  }
   0xf   : > { %p526_p3 = por %p55_p2, %p54_p1  ;;  %p60_p4 = scmp.ne.s32.totalorder %s452_s14, %s448_s13 }
  0x10   : > { %s41_s23 = sadd.s32 1, %s524_s21  ;;  %p61_p5 = scmp.eq.s32.totalorder %s265_s18, 0 }
  0x11   : > { %s42_s24 = ssub.s32 %s33_s19, %s41_s23  ;;  %p289_p8 = scmp.lt.s32.totalorder %s468_s0, 4 }
  0x12   : > { %p45_p6 = scmp.eq.s32.totalorder %s42_s24, 0  ;;  %p534_p7 = por %p61_p5, %p60_p4 }
  0x13   : > { %s110_s26 = sand.u32 1, %s456_s15   ;;  %s269_s29 = sshll.u32 %s464_s17, 2 }
  0x14   : > { %s541_s27 = scalar_select %p45_p6, %s456_s15, %s47_s20  }
  0x15   : > { %s268_s28 = sshll.u32 %s110_s26, 2  ;;  %s226_s4 = scalar_lea.hbm %s584_s1, %s269_s29 }
  0x16   : > { %s114_s5 = scalar_lea.vmem [#allocation5], %s268_s28  ;;  %s227_s7 = scalar_lea.hbm %s226_s4, 4 }
  0x17   : > { %s125_s6 = sshll.u32 %s114_s5, 4  ;;  %s123_s8 = sshll.u32 %s227_s7, 4  ;;  %s126_s6 = int_to_ptr.vmem [resolvable:$true] %s125_s6  ;;  %s124_s8 = int_to_ptr.hbm [resolvable:$true] %s123_s8 }
  0x18   : > { %p286_p9 = pnand %p289_p8, %p526_p3  ;;  %p270_p10 = scmp.ge.s32.totalorder %s468_s0, 1 }
  0x19   : > { %p130_p11 = scmp.lt.s32.totalorder %s468_s0, 5  ;;  %s111_s9 = scalar_lea.sflag [#allocation6], %s110_s26 }
  0x1a   : > { %288 = dma.hbm_to_vmem [thread:$0]  (!%p286_p9), %s124_s8, 64, %s126_s6, %s111_s9  }
  0x1b   : > { %p131_p12 = pnand %p270_p10, %p130_p11 }
  0x1c   : > { %s136_s10 = sand.u32 (!%p131_p12), 1, %s452_s14  }
  0x1d   : > { %134 = sbr.rel (%p131_p12) target bundleno = 75 (0x4b), region = 24  ;;  %s271_s11 = sshll.u32 (!%p131_p12), %s136_s10, 2 }
  0x1e   : > { %s137_s12 = scalar_lea.sflag (!%p131_p12), [#allocation6], %s136_s10  ;;  %s140_s13 = scalar_lea.vmem (!%p131_p12), [#allocation5], %s271_s11 }
  0x22   : > { %439 = dma.done.wait (%p534_p7), %s137_s12, 64  }
  0x23   : > { %441 = vsyncadd (%p534_p7), %s137_s12, 4294967232  ;;  %s156_s19 = sld [smem:[#allocation4 + %s460_s16]]  ;;  %v157_v0 = vld [vmem:[%s140_s13] sm:$0xf]  ;;  %p272_p13 = scmp.ne.s32.totalorder %s460_s16, 0 }
  0x26   : > { %163 = sbr.rel (%p272_p13) target bundleno = 47 (0x2f), region = 32 }
  0x29   : > { %v158_v1 = vstv %s156_s19 }
  0x2a   : > { %v159_v2 = vmul.f32 %v158_v1, %v157_v0 }
  0x2b   : > { %v164_v3 = vlaneseq }
  0x2d   : > { %vm166_vm0 = vcmp.lt.s32.totalorder %v164_v3, 512 }
  0x2e   : > { %168 = vst.msk [vmem:[#allocation2] sm:$0xf] %vm166_vm0, %v159_v2 }
  0x2f PF: > { %p273_p0 = scmp.le.s32.totalorder %s460_s16, 0 }
  0x31   : > { %172 = sbr.rel (%p273_p0) target bundleno = 58 (0x3a), region = 36 }
  0x36   : > { %v173_v4 = vld [vmem:[#allocation2] sm:$0xf]  ;;  %v175_v5 = vlaneseq }
  0x37   : > { %v174_v6 = vadd.f32 %v173_v4, %v159_v2 }
  0x38   : > { %vm177_vm1 = vcmp.lt.s32.totalorder %v175_v5, 512 }
  0x39   : > { %179 = vst.msk [vmem:[#allocation2] sm:$0xf] %vm177_vm1, %v174_v6 }
  0x3a PF: > { %p274_p1 = scmp.ne.s32.totalorder %s460_s16, 3 }
  0x3c   : > { %183 = sbr.rel (%p274_p1) target bundleno = 69 (0x45), region = 40 }
  0x41   : > { %v184_v7 = vld [vmem:[#allocation2] sm:$0xf]  ;;  %v185_v8 = vlaneseq }
  0x43   : > { %vm187_vm2 = vcmp.lt.s32.totalorder %v185_v8, 512 }
  0x44   : > { %189 = vst.msk [vmem:[#allocation8] sm:$0xf] %vm187_vm2, %v184_v7 }
  0x45 PF: > { %p290_p2 = scmp.eq.s32.totalorder %s265_s18, 3  ;;  %s200_s23 = sshll.u32 %s585_s2, 4  ;;  %s201_s23 = int_to_ptr.hbm [resolvable:$true] %s200_s23 }
  0x46   : > { %s471_s24 = smov [#allocation8]  }
  0x47   : > { %s198_s25 = sshll.u32 %s471_s24, 4  ;;  %s199_s25 = int_to_ptr.vmem [resolvable:$true] %s198_s25 }
  0x48   : > { %282 = dma.vmem_to_hbm [thread:$0]  (%p290_p2), %s199_s25, 64, %s201_s23, [#allocation7]  }
  0x49   : > { %443 = dma.done.wait (%p290_p2), [#allocation7], 64  }
  0x4a   : > { %445 = vsyncadd (%p290_p2), [#allocation7], 4294967232 }
  0x4b PF: > { %s24_s0 = sadd.s32 1, %s468_s0   ;;  %s588_s13 = smov %s452_s14 }
  0x4c   : > { %p21_p3 = scmp.ge.s32.totalorder %s24_s0, 6   ;;  %s589_s14 = smov %s456_s15 }
  0x4d   : > { %s590_s15 = smov %s541_s27  ;;  %s591_s16 = smov %s464_s17 }
  0x4e   : > { %s592_s17 = smov %s524_s21  ;;  %23 = sbr.rel (!%p21_p3) target bundleno = 11 (0xb), region = 74 }
  0x53   :  { %214 = vsyncpa [#allocation6], 1 }
  0x54   :  { %216 = vsyncpa [#allocation6 + $0x1], 1 }
  0x55   :  { %217 = vsyncpa [#allocation7], 1 }
  0x56   :  { %219 = vsyncpa [#allocation7 + $0x1], 1 }

</bundles_post_ra>
